<compile_context>
chip_gen: v6e
topology: v6e:2x2x1
jax: 0.10.0
libtpu: 0.0.40
codegen_flags: <defaults>
</compile_context>

<pallas_src>
import functools

import jax
import jax.numpy as jnp
from jax.experimental import pallas as pl
from jax.experimental.pallas import tpu as pltpu


def _ce_kernel(logits_ref, target_ref, out_ref, *, ignore_index, n_rows, tile_n):
    i = pl.program_id(0)

    x_in = logits_ref[...]            # (tile_n, C), input dtype (f32 or bf16)
    t = target_ref[...]               # (tile_n, 1) int32

    # One-hot gather of the target logit, done on the raw input dtype.
    # (Select of a single value + sum of zeros is exact in bf16, and this
    #  pass can overlap with the max pass below.)
    col = jax.lax.broadcasted_iota(jnp.int32, x_in.shape, dimension=1)
    onehot = col == t                                           # (tile_n, C)
    tgt = jnp.sum(jnp.where(onehot, x_in, jnp.zeros_like(x_in)),
                  axis=-1, keepdims=True).astype(jnp.float32)   # (tile_n, 1)

    # Row max in the input dtype (max is exact); upcast only the exp/LSE path.
    m = jnp.max(x_in, axis=-1, keepdims=True)                   # (tile_n, 1)
    m_f32 = m.astype(jnp.float32)
    z = x_in.astype(jnp.float32) - m_f32                        # (tile_n, C) f32
    lse = jnp.log(jnp.sum(jnp.exp(z), axis=-1, keepdims=True))  # (tile_n, 1) f32

    # Valid-row mask: ignore_index rows always; out-of-bounds rows only if the
    # last tile is actually partial (static check -> no iota/compare cost on
    # evenly divided grids).
    valid = t != ignore_index                                   # (tile_n, 1)
    if n_rows % tile_n != 0:
        row = jax.lax.broadcasted_iota(jnp.int32, t.shape, dimension=0)
        valid = valid & ((i * tile_n + row) < n_rows)

    # nll = logsumexp(x) - x_target = (lse + m) - tgt ; masked rows contribute 0.
    nll = jnp.where(valid, lse + m_f32 - tgt, 0.0)              # (tile_n, 1)

    s = jnp.sum(nll)                                            # scalar partial sum
    c = jnp.sum(valid.astype(jnp.float32))                      # scalar partial count

    # Lane-dense per-tile partial output: row 0 = sum, row 1 = count, rest 0.
    rowsel = jax.lax.broadcasted_iota(jnp.int32, out_ref.shape, dimension=1)
    out_ref[...] = jnp.where(rowsel == 0, s, jnp.where(rowsel == 1, c, 0.0))


def _choose_tile_n(N, C, in_itemsize, max_tile_n=None):
    """Row-tile size from the real VMEM working set, capped at roofline-sized
    blocks, with >= ~8 pipelined grid steps for large N."""
    # Per-row bytes of one pipelined buffer: DMA'd logits row (input dtype)
    # plus the lane-padded (tile_n, 1) int32 target row (~512 B in VMEM).
    per_row_buf = C * in_itemsize + 512
    # Per-row bytes of the fused f32 compute working set (upcast copy, exp,
    # one-hot/iota temporaries) — dominates regardless of input dtype.
    per_row_work = 3 * C * 4
    tile_n = min((5 << 20) // per_row_buf,      # ~5 MiB per buffer (x2 buffers)
                 (16 << 20) // per_row_work)    # ~16 MiB for fused f32 temps
    if N > 2048:
        # Keep the pipeline busy: at least ~8 grid steps, blocks >= 256 rows.
        tile_n = min(tile_n, max(256, -(-N // 8)))
    if max_tile_n is not None:
        tile_n = min(tile_n, int(max_tile_n))
    tile_n = max(8, (tile_n // 8) * 8)          # sublane friendly
    if N <= tile_n:
        tile_n = N                              # single block == full array
    return int(tile_n)


def ce_loss(logits, target, *, ratio=1.0, ignore_index=-100, max_tile_n=None):
    """ratio * cross_entropy(logits[N, C], target[N]) with reduction='mean'."""
    N, C = logits.shape
    target2d = target.astype(jnp.int32).reshape(N, 1)
    tile_n = _choose_tile_n(N, C, jnp.dtype(logits.dtype).itemsize, max_tile_n)
    num_tiles = pl.cdiv(N, tile_n)

    kernel = functools.partial(_ce_kernel,
                               ignore_index=int(ignore_index),
                               n_rows=int(N),
                               tile_n=int(tile_n))

    # Per-tile partial [sum, count] blocks; row axis is fully parallel so the
    # grid can be sharded across both TensorCores on v7x.
    partials = pl.pallas_call(
        kernel,
        out_shape=jax.ShapeDtypeStruct((num_tiles, 8, 128), jnp.float32),
        grid_spec=pltpu.PrefetchScalarGridSpec(
            num_scalar_prefetch=0,
            grid=(num_tiles,),
            in_specs=[
                # TODO(synk): sweep pipeline_mode=pl.Buffered(3) here if the
                # trace shows exposed DMA (block is read three times).
                pl.BlockSpec((tile_n, C), lambda i: (i, 0)),
                pl.BlockSpec((tile_n, 1), lambda i: (i, 0)),
            ],
            out_specs=pl.BlockSpec((1, 8, 128), lambda i: (i, 0, 0)),
        ),
        compiler_params=pltpu.CompilerParams(
            dimension_semantics=("parallel",),
            vmem_limit_bytes=48 << 20),   # safe on v5e/v6e (128 MiB) and v7x (64 MiB/TC)
    )(logits, target2d)

    total = jnp.sum(partials[:, 0, 0])
    count = jnp.sum(partials[:, 1, 0])
    # reduction='mean' over non-ignored rows, scaled by ratio.
    # (If every row is ignored this is 0/0 = NaN, matching PyTorch.)
    return ratio * total / count


if __name__ == "__main__":
    # CELoss(ratio=1, weight=None, ignore_index=-100, reduction='mean')
    key = jax.random.PRNGKey(0)
    k1, k2, k3, k4, k5, k6 = jax.random.split(key, 6)

    def ref_loss(logits, target, ratio=1.0, ignore_index=-100):
        logp = jax.nn.log_softmax(logits.astype(jnp.float32), axis=-1)
        valid = target != ignore_index
        safe_t = jnp.where(valid, target, 0)
        nll = -jnp.take_along_axis(logp, safe_t[:, None], axis=-1)[:, 0]
        return ratio * jnp.sum(jnp.where(valid, nll, 0.0)) / jnp.sum(valid)

    # Case 1: small f32 batch with one ignored row (single-block path).
    N, C = 8, 32
    logits = jax.random.normal(k1, (N, C), dtype=jnp.float32)
    target = jax.random.randint(k2, (N,), 0, C, dtype=jnp.int32)
    target = target.at[3].set(-100)
    loss = ce_loss(logits, target, ratio=1.0)
    jax.block_until_ready(loss)
    ref = ref_loss(logits, target, ratio=1.0)
    assert jnp.allclose(loss, ref, rtol=1e-5, atol=1e-5), (loss, ref)

    # Case 2: N not a multiple of the tile — exercises the masked partial
    # last tile (grid of 3 with tile_n forced to 128) and the parallel grid.
    N2, C2 = 300, 32
    logits2 = jax.random.normal(k3, (N2, C2), dtype=jnp.float32)
    target2 = jax.random.randint(k4, (N2,), 0, C2, dtype=jnp.int32)
    target2 = target2.at[7].set(-100)
    loss2 = ce_loss(logits2, target2, ratio=0.5, max_tile_n=128)
    jax.block_until_ready(loss2)
    ref2 = ref_loss(logits2, target2, ratio=0.5)
    assert jnp.allclose(loss2, ref2, rtol=1e-5, atol=1e-5), (loss2, ref2)

    # Case 3: bf16 logits (max/one-hot stay in bf16, exp/LSE path in f32).
    N3, C3 = 64, 32
    logits3 = jax.random.normal(k1, (N3, C3), dtype=jnp.float32).astype(jnp.bfloat16)
    target3 = jax.random.randint(k2, (N3,), 0, C3, dtype=jnp.int32)
    loss3 = ce_loss(logits3, target3, ratio=1.0)
    jax.block_until_ready(loss3)
    ref3 = ref_loss(logits3, target3, ratio=1.0)
    assert jnp.allclose(loss3, ref3, rtol=1e-4, atol=1e-4), (loss3, ref3)

    # Case 4: larger N — exercises the ">= ~8 grid steps" clamp (auto tile,
    # multi-step parallel grid with a partial last tile).
    N4, C4 = 2300, 64
    logits4 = jax.random.normal(k5, (N4, C4), dtype=jnp.float32)
    target4 = jax.random.randint(k6, (N4,), 0, C4, dtype=jnp.int32)
    target4 = target4.at[13].set(-100).at[999].set(-100)
    loss4 = ce_loss(logits4, target4, ratio=2.0)
    jax.block_until_ready(loss4)
    ref4 = ref_loss(logits4, target4, ratio=2.0)
    assert jnp.allclose(loss4, ref4, rtol=1e-5, atol=1e-5), (loss4, ref4)

    print("KERNEL_OK")
</pallas_src>

<mosaic_0001>
module attributes {stable_mosaic.version = 11 : i64} {
  func.func @_ce_kernel(%arg0: i32, %arg1: memref<8x32xf32, #tpu.memory_space<vmem>>, %arg2: memref<8x1xi32, #tpu.memory_space<vmem>>, %arg3: memref<1x8x128xf32, #tpu.memory_space<vmem>>) attributes {dimension_semantics = [#tpu.dimension_semantics<parallel>], iteration_bounds = array<i64: 1>, scalar_prefetch = 0 : i64, scratch_operands = 0 : i64, tpu.core_type = #tpu.core_type<tc>, window_params = [{transform_indices = @transform_0, window_bounds = array<i64: 8, 32>}, {transform_indices = @transform_1, window_bounds = array<i64: 8, 1>}, {transform_indices = @transform_2, window_bounds = array<i64: 1, 8, 128>}]} {
    %c0 = arith.constant 0 : index
    %c0_0 = arith.constant 0 : index
    %0 = vector.load %arg1[%c0, %c0_0] : memref<8x32xf32, #tpu.memory_space<vmem>>, vector<8x32xf32>
    %c0_1 = arith.constant 0 : index
    %c0_2 = arith.constant 0 : index
    %1 = vector.load %arg2[%c0_1, %c0_2] : memref<8x1xi32, #tpu.memory_space<vmem>>, vector<8x1xi32>
    %2 = tpu.iota {dimensions = array<i32: 1>} : vector<8x32xi32>
    %3 = vector.broadcast %1 : vector<8x1xi32> to vector<8x32xi32>
    %4 = arith.cmpi eq, %2, %3 : vector<8x32xi32>
    %cst = arith.constant 0.000000e+00 : f32
    %5 = vector.broadcast %cst : f32 to vector<8x32xf32>
    %6 = arith.select %4, %0, %5 : vector<8x32xi1>, vector<8x32xf32>
    %cst_3 = arith.constant dense<0.000000e+00> : vector<8xf32>
    %7 = vector.multi_reduction <add>, %6, %cst_3 [1] : vector<8x32xf32> to vector<8xf32>
    %8 = vector.shape_cast %7 : vector<8xf32> to vector<8x1xf32>
    %cst_4 = arith.constant dense<0xFF800000> : vector<8xf32>
    %9 = vector.multi_reduction <maximumf>, %0, %cst_4 [1] : vector<8x32xf32> to vector<8xf32>
    %10 = vector.shape_cast %9 : vector<8xf32> to vector<8x1xf32>
    %11 = vector.broadcast %10 : vector<8x1xf32> to vector<8x32xf32>
    %12 = arith.subf %0, %11 : vector<8x32xf32>
    %13 = math.exp %12 : vector<8x32xf32>
    %cst_5 = arith.constant dense<0.000000e+00> : vector<8xf32>
    %14 = vector.multi_reduction <add>, %13, %cst_5 [1] : vector<8x32xf32> to vector<8xf32>
    %15 = vector.shape_cast %14 : vector<8xf32> to vector<8x1xf32>
    %16 = math.log %15 : vector<8x1xf32>
    %c-100_i32 = arith.constant -100 : i32
    %17 = vector.broadcast %c-100_i32 : i32 to vector<8x1xi32>
    %18 = arith.cmpi ne, %1, %17 : vector<8x1xi32>
    %19 = arith.addf %16, %10 : vector<8x1xf32>
    %20 = arith.subf %19, %8 : vector<8x1xf32>
    %cst_6 = arith.constant 0.000000e+00 : f32
    %21 = vector.broadcast %cst_6 : f32 to vector<8x1xf32>
    %22 = arith.select %18, %20, %21 : vector<8x1xi1>, vector<8x1xf32>
    %23 = vector.shape_cast %22 : vector<8x1xf32> to vector<1x8x1xf32>
    %cst_7 = arith.constant dense<0.000000e+00> : vector<1xf32>
    %24 = vector.multi_reduction <add>, %23, %cst_7 [1, 2] : vector<1x8x1xf32> to vector<1xf32>
    %25 = vector.shape_cast %24 : vector<1xf32> to vector<1x1x1xf32>
    %26 = vector.extract %25[0, 0, 0] : f32 from vector<1x1x1xf32>
    %27 = arith.extui %18 : vector<8x1xi1> to vector<8x1xi32>
    %28 = arith.sitofp %27 : vector<8x1xi32> to vector<8x1xf32>
    %29 = vector.shape_cast %28 : vector<8x1xf32> to vector<1x8x1xf32>
    %cst_8 = arith.constant dense<0.000000e+00> : vector<1xf32>
    %30 = vector.multi_reduction <add>, %29, %cst_8 [1, 2] : vector<1x8x1xf32> to vector<1xf32>
    %31 = vector.shape_cast %30 : vector<1xf32> to vector<1x1x1xf32>
    %32 = vector.extract %31[0, 0, 0] : f32 from vector<1x1x1xf32>
    %33 = tpu.iota {dimensions = array<i32: 1>} : vector<1x8x128xi32>
    %c0_i32 = arith.constant 0 : i32
    %34 = vector.broadcast %c0_i32 : i32 to vector<1x8x128xi32>
    %35 = arith.cmpi eq, %33, %34 : vector<1x8x128xi32>
    %c1_i32 = arith.constant 1 : i32
    %36 = vector.broadcast %c1_i32 : i32 to vector<1x8x128xi32>
    %37 = arith.cmpi eq, %33, %36 : vector<1x8x128xi32>
    %cst_9 = arith.constant 0.000000e+00 : f32
    %38 = vector.broadcast %32 : f32 to vector<1x8x128xf32>
    %39 = vector.broadcast %cst_9 : f32 to vector<1x8x128xf32>
    %40 = arith.select %37, %38, %39 : vector<1x8x128xi1>, vector<1x8x128xf32>
    %41 = vector.broadcast %26 : f32 to vector<1x8x128xf32>
    %42 = arith.select %35, %41, %40 : vector<1x8x128xi1>, vector<1x8x128xf32>
    %c0_10 = arith.constant 0 : index
    %c0_11 = arith.constant 0 : index
    %c0_12 = arith.constant 0 : index
    %43 = vector.load %arg3[%c0_10, %c0_11, %c0_12] : memref<1x8x128xf32, #tpu.memory_space<vmem>>, vector<1x8x128xf32>
    tpu.vector_store %arg3[%c0_10, %c0_11, %c0_12], %42 {strides = array<i32>} : memref<1x8x128xf32, #tpu.memory_space<vmem>>, vector<1x8x128xf32>,
    return
  }
  func.func @transform_0(%arg0: i32) -> (i32, i32) {
    %c0_i32 = arith.constant 0 : i32
    %c0_i32_0 = arith.constant 0 : i32
    return %arg0, %c0_i32 : i32, i32
  }
  func.func @transform_1(%arg0: i32) -> (i32, i32) {
    %c0_i32 = arith.constant 0 : i32
    %c0_i32_0 = arith.constant 0 : i32
    return %arg0, %c0_i32 : i32, i32
  }
  func.func @transform_2(%arg0: i32) -> (i32, i32, i32) {
    %c0_i32 = arith.constant 0 : i32
    %c0_i32_0 = arith.constant 0 : i32
    %c0_i32_1 = arith.constant 0 : i32
    return %arg0, %c0_i32, %c0_i32_0 : i32, i32, i32
  }
}

</mosaic_0001>

<bundles_post_ra>
// kernel: tpu_custom_call.1
= control target key start
LH: loop header
LB: loop body
LE: loop exit
PB: predicated region body
PF: predicated region fallthrough
CT: control target
= control target key end

     0   :  { %vm21_vm0 = vcmask 261120   ;;  %s151_s0 = inlined_call_operand.vmem [shape: f32[8,32], index: 0, kind: input, shape index: {}]   ;;  %s152_s1 = inlined_call_operand.vmem [shape: s32[8,1], index: 1, kind: input, shape index: {}]   ;;  %s153_s2 = inlined_call_operand.hbm [shape: f32[1,8,128], index: 2, kind: output, shape index: {}]  }
   0x1   :  { %v12_v0 = vld [vmem:[%s151_s0] sm:$0xff] }
   0x2   :  { %7 = vsyncpa [#allocation3], 0  ;;  %v25_v1 = vsel %vm21_vm0, %v12_v0, -inf  ;;  %v121_v2 = vmov 0   ;;  %v13_v3 = vld [vmem:[%s152_s1] sm:$0xff]  ;;  %v14_v7 = vlaneseq  ;;  %vm40_vm3 = vcmask 7168  }
   0x3   :  { %94 = vset.pattern.permute.xlu0 %v121_v2  ;;  %vm36_vm2 = vcmp.ne.s32.totalorder %v13_v3, 4294967196  ;;  %v122_v21 = vmov 0.0   ;;  %s123_s1 = smov [#allocation2]  }
   0x4   :  { %26 = vmax.xlane.f32.xlu0 %v25_v1  ;;  %v15_v8 = vand.u32 127, %v14_v7  ;;  %v86_v22 = vsel %vm36_vm2, 1.0, %v122_v21  ;;  %v64_v39 = vshrl.u32 %v14_v7, 7  ;;  %s78_s13 = sshll.u32 %s123_s1, 4  ;;  %s79_s13 = int_to_ptr.vmem [resolvable:$true] %s78_s13 }
   0x5   :  { %v53_v24 = vsel %vm40_vm3, %v86_v22, 0.0  ;;  %s99_s15 = scalar_lea.vmem %s79_s13, 128  ;;  %p104_p1 = scmp.lt.s32.totalorder %s79_s13, %s79_s13 }
   0x6   :  { %vm66_vm4 = vcmp.eq.s32.totalorder %v64_v39, 1  ;;  %vm65_vm5 = vcmp.eq.s32.totalorder %v64_v39, 0  ;;  %p100_p0 = scmp.ne.s32.totalorder %s79_s13, %s99_s15  ;;  %p105_p2 = scmp.lt.s32.totalorder %s99_s15, %s99_s15 }
   0x8   :  { %p106_p3 = por %p105_p2, %p104_p1 }
   0xa   :  { %p107_p4 = pnand %p106_p3, %p100_p0 }
  0x1a   :  { %17 = vperm.xlu0 %94, %v13_v3  }
  0x8d   :  { %v27_v4 = vpop.xlane.xlu0 %26 }
  0x8e   :  { %v28_v5 = vsub.f32 %v12_v0, %v27_v4 }
  0x90   :  { %v29_v6 = vmul.f32 1.442695, %v28_v5 }
  0x92   :  { %95 = vpow2.f32 %v29_v6 }
  0x95   :  { %v18_v9 = vpop.permute.xlu0 %17 }
  0x96   :  { %vm19_vm1 = vcmp.eq.s32.totalorder %v15_v8, %v18_v9 }
  0x97   :  { %v20_v11 = vsel %vm19_vm1, %v12_v0, 0.0 }
  0x98   :  { %v22_v13 = vsel %vm21_vm0, %v20_v11, 0.0 }
  0x9f   :  { %v96_v10 = vpop.eup %95 }
  0xa0   :  { %v31_v12 = vsel %vm21_vm0, %v96_v10, 0.0 }
  0xa1   :  { %32 = vadd.xlane.f32.xlu1 %v31_v12 }
  0xa5   :  { %23 = vadd.xlane.f32.xlu1 %v22_v13 }
 0x12a   :  { %v33_v14 = vpop.xlane.xlu1 %32 }
 0x12b   :  { %97 = vlog2.f32 %v33_v14 }
 0x12e   :  { %v24_v17 = vpop.xlane.xlu1 %23 }
 0x138   :  { %v98_v15 = vpop.eup %97 }
 0x139   :  { %v35_v16 = vmul.f32 0.6931472, %v98_v15 }
 0x13b   :  { %v37_v18 = vadd.f32 %v35_v16, %v27_v4 }
 0x13d   :  { %v38_v19 = vsub.f32 %v37_v18, %v24_v17 }
 0x13f   :  { %v39_v20 = vsel %vm36_vm2, %v38_v19, 0.0 }
 0x140   :  { %v41_v23 = vsel %vm40_vm3, %v39_v20, 0.0 }
 0x141   :  { %42 = vadd.xlane.f32.xlu1 %v41_v23 }
 0x145   :  { %54 = vadd.xlane.f32.xlu1 %v53_v24 }
 0x1ca   :  { %v43_v25 = vpop.xlane.xlu1 %42 }
 0x1cb   :  { %v44_v26 = vrot.slane %v43_v25, 4 }
 0x1cd   :  { %v45_v27 = vadd.f32 %v44_v26, %v43_v25 }
 0x1ce   :  { %v55_v28 = vpop.xlane.xlu1 %54 }
 0x1cf   :  { %v46_v29 = vrot.slane %v45_v27, 2  ;;  %v56_v30 = vrot.slane %v55_v28, 4 }
 0x1d1   :  { %v57_v31 = vadd.f32 %v56_v30, %v55_v28  ;;  %v47_v32 = vadd.f32 %v46_v29, %v45_v27 }
 0x1d3   :  { %v58_v33 = vrot.slane %v57_v31, 2  ;;  %v48_v34 = vrot.slane %v47_v32, 1 }
 0x1d5   :  { %v59_v35 = vadd.f32 %v58_v33, %v57_v31  ;;  %v49_v36 = vadd.f32 %v48_v34, %v47_v32 }
 0x1d7   :  { %87 = vpush %v49_v36  ;;  %v60_v37 = vrot.slane %v59_v35, 1 }
 0x1d9   :  { %v61_v38 = vadd.f32 %v60_v37, %v59_v35 }
 0x1db   :  { %89 = vpush %v61_v38 }
 0x208   :  { %s88_s0 = spop %87 }
 0x209   :  { %v69_v41 = vstv %s88_s0 }
 0x20c   :  { %s90_s14 = spop %89 }
 0x20d   :  { %v67_v40 = vstv %s90_s14 }
 0x20e   :  { %v68_v42 = vsel %vm66_vm4, %v67_v40, 0.0 }
 0x20f   :  { %v70_v43 = vsel %vm65_vm5, %v69_v41, %v68_v42 }
 0x210   :  { %71 = vst [vmem:[#allocation2] sm:$0xff] %v70_v43 }
 0x211   :  { %110 = shalt.err (!%p107_p4)
}
 0x212   :  { %81 = dma.vmem_to_hbm [thread:$0]  %s79_s13, 128, %s153_s2, [#allocation3]  }
 0x213   :  { %119 = dma.done.wait [#allocation3], 128  }
 0x214   :  { %120 = vsyncadd [#allocation3], 4294967168 }
 0x215   :  { %85 = vsyncpa [#allocation3], 1 }

</bundles_post_ra>
